<compile_context>
chip_gen: v6e
topology: v6e:2x2x1
jax: 0.10.0
libtpu: 0.0.40
codegen_flags: <defaults>
</compile_context>

<pallas_src>
import numpy as np
import jax
import jax.numpy as jnp
from jax.experimental import pallas as pl
from jax.experimental.pallas import tpu as pltpu


# ----------------------------- config (synthetic, small) -----------------------------
class MelSpectrogramConfig:
    sr = 16000
    n_fft = 256
    win_length = 256          # == n_fft (no extra window padding needed)
    hop_length = 64
    f_min = 0.0
    f_max = 8000.0
    n_mels = 32
    power = 1.0
    center = False


# ----------------------------- librosa-style mel filterbank --------------------------
def _hz_to_mel(f):
    f = np.asarray(f, dtype=np.float64)
    f_sp = 200.0 / 3
    mels = f / f_sp
    min_log_hz = 1000.0
    min_log_mel = min_log_hz / f_sp
    logstep = np.log(6.4) / 27.0
    return np.where(f >= min_log_hz,
                    min_log_mel + np.log(np.maximum(f, 1e-12) / min_log_hz) / logstep,
                    mels)


def _mel_to_hz(m):
    m = np.asarray(m, dtype=np.float64)
    f_sp = 200.0 / 3
    freqs = f_sp * m
    min_log_hz = 1000.0
    min_log_mel = min_log_hz / f_sp
    logstep = np.log(6.4) / 27.0
    return np.where(m >= min_log_mel,
                    min_log_hz * np.exp(logstep * (m - min_log_mel)),
                    freqs)


def librosa_mel_filters(sr, n_fft, n_mels, fmin, fmax):
    """Equivalent of librosa.filters.mel(..., htk=False, norm='slaney'). Returns (n_mels, n_freqs)."""
    n_freqs = n_fft // 2 + 1
    fftfreqs = np.linspace(0.0, sr / 2.0, n_freqs)
    mel_pts = _mel_to_hz(np.linspace(_hz_to_mel(fmin), _hz_to_mel(fmax), n_mels + 2))
    fdiff = np.diff(mel_pts)
    ramps = mel_pts[:, None] - fftfreqs[None, :]
    weights = np.zeros((n_mels, n_freqs), dtype=np.float64)
    for i in range(n_mels):
        lower = -ramps[i] / fdiff[i]
        upper = ramps[i + 2] / fdiff[i + 1]
        weights[i] = np.maximum(0.0, np.minimum(lower, upper))
    enorm = 2.0 / (mel_pts[2:n_mels + 2] - mel_pts[:n_mels])   # slaney norm
    weights *= enorm[:, None]
    return weights.astype(np.float32)


# ----------------------------- Pallas kernel ------------------------------------------
def mel_kernel(frames_ref, basis_ref, fb_ref, out_ref):
    # frames_ref: (1, n_fft, FT)  bf16  transposed frames (sample index x frame index)
    # basis_ref:  (2*n_k, n_fft)  bf16  rows [0,n_k) = win*cos, rows [n_k,2n_k) = -win*sin
    # fb_ref:     (n_mels, n_k)   f32   slaney mel filterbank (Nyquist column dropped)
    # out_ref:    (1, n_mels, FT) f32   log-mel, frames on the lane axis (dense stores)
    n_k = fb_ref.shape[1]
    x = frames_ref[0]                                                       # (n_fft, FT)
    # fused windowed rfft: one MXU pass producing [Re; Im]
    spec = jnp.dot(basis_ref[...], x, preferred_element_type=jnp.float32)   # (2*n_k, FT)
    re = spec[:n_k]
    im = spec[n_k:]
    mag = jnp.sqrt(re * re + im * im)                                       # power = 1.0
    mel = jnp.dot(fb_ref[...], mag, preferred_element_type=jnp.float32)     # (n_mels, FT)
    out_ref[0] = jnp.log(jnp.maximum(mel, 1e-5))


def mel_spectrogram(audio, cfg=MelSpectrogramConfig):
    """audio: [B, T] float32 -> [B, 1, n_mels, n_frames] float32 (matches PyTorch forward)."""
    B, T = audio.shape
    n_fft, hop, win = cfg.n_fft, cfg.hop_length, cfg.win_length
    n_freqs = n_fft // 2 + 1
    pad = int((n_fft - hop) / 2)

    # --- glue: reflect pad + strided framing, built directly in the TRANSPOSED layout ---
    # TODO(synk): for long audio, build frames inside the kernel from the padded signal
    # (manual DMA / pl.ds) to avoid this 4x HBM expansion (hop=64 vs n_fft=256).
    padded = jnp.pad(audio, ((0, 0), (pad, pad)), mode="reflect")             # [B, T_pad]
    T_pad = T + 2 * pad
    n_frames = 1 + (T_pad - n_fft) // hop
    idx_t = np.arange(n_fft)[:, None] + hop * np.arange(n_frames)[None, :]    # (n_fft, n_frames)
    frames_t = padded[:, idx_t].astype(jnp.bfloat16)                          # [B, n_fft, n_frames]

    # --- constants: mel filterbank + window-folded fused DFT basis ---
    n = np.arange(win, dtype=np.float64)
    window = 0.5 * (1.0 - np.cos(2.0 * np.pi * n / win))                      # periodic Hann
    if win < n_fft:                                                           # torch centers short windows
        lp = (n_fft - win) // 2
        window = np.pad(window, (lp, n_fft - win - lp))

    mel_fb = librosa_mel_filters(cfg.sr, n_fft, cfg.n_mels, cfg.f_min, cfg.f_max)  # (n_mels, n_freqs)
    # Drop the Nyquist bin only when its mel weights are exactly zero (true for f_max <= sr/2):
    # the frequency axis becomes a lane-aligned 128 instead of 129.
    if np.all(mel_fb[:, n_fft // 2] == 0.0):
        n_k = n_fft // 2
    else:
        n_k = n_freqs
    fb = jnp.asarray(mel_fb[:, :n_k].astype(np.float32))                      # (n_mels, n_k)

    kk = np.arange(n_k, dtype=np.float64)[:, None]
    nn_ = np.arange(n_fft, dtype=np.float64)[None, :]
    ang = 2.0 * np.pi * kk * nn_ / n_fft
    basis = np.concatenate([np.cos(ang), -np.sin(ang)], axis=0) * window[None, :]
    basis = jnp.asarray(basis.astype(np.float32)).astype(jnp.bfloat16)        # (2*n_k, n_fft)

    # --- frame-axis tiling: full extent when small, else lane-aligned 512-frame blocks ---
    ft = n_frames if n_frames <= 512 else 512
    grid = (B, pl.cdiv(n_frames, ft))

    out = pl.pallas_call(
        mel_kernel,
        out_shape=jax.ShapeDtypeStruct((B, cfg.n_mels, n_frames), jnp.float32),
        grid=grid,
        in_specs=[
            pl.BlockSpec((1, n_fft, ft), lambda b, t: (b, 0, t)),
            pl.BlockSpec((2 * n_k, n_fft), lambda b, t: (0, 0)),
            pl.BlockSpec((cfg.n_mels, n_k), lambda b, t: (0, 0)),
        ],
        out_specs=pl.BlockSpec((1, cfg.n_mels, ft), lambda b, t: (b, 0, t)),
        compiler_params=pltpu.CompilerParams(
            dimension_semantics=("parallel", "parallel")),
    )(frames_t, basis, fb)

    # [B, n_mels, n_frames] -> [B, 1, n_mels, n_frames]; no transpose needed (already lane-dense).
    return out[:, None, :, :]


if __name__ == "__main__":
    key = jax.random.PRNGKey(0)
    B, T = 2, 1024
    audio = jax.random.normal(key, (B, T), dtype=jnp.float32)

    mel = mel_spectrogram(audio)
    jax.block_until_ready(mel)

    cfg = MelSpectrogramConfig
    pad = (cfg.n_fft - cfg.hop_length) // 2
    n_frames = 1 + (T + 2 * pad - cfg.n_fft) // cfg.hop_length
    assert mel.shape == (B, 1, cfg.n_mels, n_frames), mel.shape
    assert bool(jnp.all(jnp.isfinite(mel)))
    print("KERNEL_OK")
</pallas_src>

<mosaic_0001>
module attributes {stable_mosaic.version = 11 : i64} {
  func.func @mel_kernel(%arg0: i32, %arg1: i32, %arg2: memref<1x256x16xbf16, #tpu.memory_space<vmem>>, %arg3: memref<256x256xbf16, #tpu.memory_space<vmem>>, %arg4: memref<32x128xf32, #tpu.memory_space<vmem>>, %arg5: memref<1x32x16xf32, #tpu.memory_space<vmem>>) attributes {dimension_semantics = [#tpu.dimension_semantics<parallel>, #tpu.dimension_semantics<parallel>], iteration_bounds = array<i64: 2, 1>, scalar_prefetch = 0 : i64, scratch_operands = 0 : i64, tpu.core_type = #tpu.core_type<tc>, window_params = [{transform_indices = @transform_0, window_bounds = array<i64: 1, 256, 16>}, {pipeline_mode = #tpu.pipeline_mode<synchronous>, transform_indices = @transform_1, window_bounds = array<i64: 256, 256>}, {pipeline_mode = #tpu.pipeline_mode<synchronous>, transform_indices = @transform_2, window_bounds = array<i64: 32, 128>}, {transform_indices = @transform_3, window_bounds = array<i64: 1, 32, 16>}]} {
    %c0 = arith.constant 0 : index
    %c0_0 = arith.constant 0 : index
    %c0_1 = arith.constant 0 : index
    %0 = vector.load %arg2[%c0, %c0_0, %c0_1] : memref<1x256x16xbf16, #tpu.memory_space<vmem>>, vector<1x256x16xbf16>
    %1 = vector.shape_cast %0 : vector<1x256x16xbf16> to vector<256x16xbf16>
    %c0_2 = arith.constant 0 : index
    %c0_3 = arith.constant 0 : index
    %2 = vector.load %arg3[%c0_2, %c0_3] : memref<256x256xbf16, #tpu.memory_space<vmem>>, vector<256x256xbf16>
    %cst = arith.constant dense<0.000000e+00> : vector<256x16xf32>
    %3 = tpu.matmul %2, %1, %cst {dimension_numbers = #tpu.dot_dimension_numbers<[1], [0], [0], [1], [0, 0, 1, 1], [], []>} : vector<256x256xbf16>, vector<256x16xbf16>, vector<256x16xf32> -> vector<256x16xf32>
    %4 = vector.extract_strided_slice %3 {offsets = [0, 0], sizes = [128, 16], strides = [1, 1]} : vector<256x16xf32> to vector<128x16xf32>
    %5 = vector.extract_strided_slice %3 {offsets = [128, 0], sizes = [128, 16], strides = [1, 1]} : vector<256x16xf32> to vector<128x16xf32>
    %6 = arith.mulf %4, %4 : vector<128x16xf32>
    %7 = arith.mulf %5, %5 : vector<128x16xf32>
    %8 = arith.addf %6, %7 : vector<128x16xf32>
    %9 = math.sqrt %8 : vector<128x16xf32>
    %c0_4 = arith.constant 0 : index
    %c0_5 = arith.constant 0 : index
    %10 = vector.load %arg4[%c0_4, %c0_5] : memref<32x128xf32, #tpu.memory_space<vmem>>, vector<32x128xf32>
    %cst_6 = arith.constant dense<0.000000e+00> : vector<32x16xf32>
    %11 = tpu.matmul %10, %9, %cst_6 {dimension_numbers = #tpu.dot_dimension_numbers<[1], [0], [0], [1], [0, 0, 1, 1], [], []>} : vector<32x128xf32>, vector<128x16xf32>, vector<32x16xf32> -> vector<32x16xf32>
    %cst_7 = arith.constant 9.99999974E-6 : f32
    %12 = vector.broadcast %cst_7 : f32 to vector<32x16xf32>
    %13 = arith.maximumf %11, %12 : vector<32x16xf32>
    %14 = math.log %13 : vector<32x16xf32>
    %c0_8 = arith.constant 0 : index
    %c0_9 = arith.constant 0 : index
    %c0_10 = arith.constant 0 : index
    %15 = vector.load %arg5[%c0_8, %c0_9, %c0_10] : memref<1x32x16xf32, #tpu.memory_space<vmem>>, vector<1x32x16xf32>
    %16 = vector.shape_cast %15 : vector<1x32x16xf32> to vector<32x16xf32>
    %17 = vector.shape_cast %14 : vector<32x16xf32> to vector<1x32x16xf32>
    tpu.vector_store %arg5[%c0_8, %c0_9, %c0_10], %17 {strides = array<i32>} : memref<1x32x16xf32, #tpu.memory_space<vmem>>, vector<1x32x16xf32>,
    return
  }
  func.func @transform_0(%arg0: i32, %arg1: i32) -> (i32, i32, i32) {
    %c0_i32 = arith.constant 0 : i32
    %c0_i32_0 = arith.constant 0 : i32
    return %arg0, %c0_i32, %arg1 : i32, i32, i32
  }
  func.func @transform_1(%arg0: i32, %arg1: i32) -> (i32, i32) {
    %c0_i32 = arith.constant 0 : i32
    %c0_i32_0 = arith.constant 0 : i32
    %c0_i32_1 = arith.constant 0 : i32
    return %c0_i32, %c0_i32_0 : i32, i32
  }
  func.func @transform_2(%arg0: i32, %arg1: i32) -> (i32, i32) {
    %c0_i32 = arith.constant 0 : i32
    %c0_i32_0 = arith.constant 0 : i32
    %c0_i32_1 = arith.constant 0 : i32
    return %c0_i32, %c0_i32_0 : i32, i32
  }
  func.func @transform_3(%arg0: i32, %arg1: i32) -> (i32, i32, i32) {
    %c0_i32 = arith.constant 0 : i32
    %c0_i32_0 = arith.constant 0 : i32
    return %arg0, %c0_i32, %arg1 : i32, i32, i32
  }
}

</mosaic_0001>

<bundles_post_ra>
// kernel: tpu_custom_call.1
= control target key start
LH: loop header
LB: loop body
LE: loop exit
PB: predicated region body
PF: predicated region fallthrough
CT: control target
= control target key end

     0   :  { %s1452_s12 = smov 0   ;;  %s1454_s13 = smov 0   ;;  %s1782_s0 = inlined_call_operand.vmem [shape: bf16[2,256,16], index: 0, kind: input, shape index: {}]   ;;  %s1783_s1 = inlined_call_operand.vmem [shape: bf16[256,256], index: 1, kind: input, shape index: {}]   ;;  %s1784_s2 = inlined_call_operand.vmem [shape: f32[32,128], index: 2, kind: input, shape index: {}]   ;;  %s1785_s3 = inlined_call_operand.vmem [shape: f32[2,32,16], index: 3, kind: output, shape index: {}]  }
   0x1   :  { %s1456_s14 = smov 0  }
   0x2 LB: > { %s25_s15 = sadd.s32 1, %s1426_s13  ;;  %p1037_p0 = scmp.ge.s32.totalorder %s1430_s14, 1  ;;  %s1430_s14 = sphi %s1456_s14, %s13_s14   ;;  %s1426_s13 = sphi %s1454_s13, %s1787_s13   ;;  %s1422_s12 = sphi %s1452_s12, %s1786_s12  }
   0x3   : > { %p27_p1 = scmp.ge.s32.totalorder %s25_s15, 2  ;;  %p156_p2 = scmp.lt.s32.totalorder %s1430_s14, 3 }
   0x5   : > { %s1789_s15 = smov (%p27_p1, %s25_s15), 0  ;;  %p157_p3 = pnand %p1037_p0, %p156_p2 }
   0x6   : > { %p186_p4 = scmp.lt.s32.totalorder (!%p157_p3), %s1422_s12, 1 }
   0x7   : > { %160 = sbr.rel (%p157_p3) target bundleno = 577 (0x241), region = 32 }
   0xc   : > { %v1322_v0 = vld [vmem:[%s1783_s1 + $0x4] ss:$8 sps:$4 sm:$0xff]   ;;  %s1791_s12 = smov (!%p186_p4, %s1422_s12), 1  ;;  %v1325_v1 = vld [vmem:[%s1783_s1 + $0x94] ss:$8 sps:$4 sm:$0xff]  }
   0xd   : > { %555 = vmatprep.mubr.bf16.mxu0 %v1322_v0  ;;  %s1092_s20 = sshll.u32 %s1791_s12, 7  ;;  %627 = vmatprep.mubr.bf16.mxu1 %v1325_v1  ;;  %v1320_v18 = vld [vmem:[%s1783_s1] ss:$8 sps:$4 sm:$0xff]   ;;  %v1323_v19 = vld [vmem:[%s1783_s1 + $0x90] ss:$8 sps:$4 sm:$0xff]  }
   0xe   : > { %s1482_s23 = scalar_lea.vmem %s1782_s0, %s1092_s20  ;;  %v1326_v20 = vld [vmem:[%s1783_s1 + $0x14] ss:$8 sps:$4 sm:$0xff]   ;;  %v1329_v21 = vld [vmem:[%s1783_s1 + $0xa4] ss:$8 sps:$4 sm:$0xff]   ;;  %v1328_v22 = vld [vmem:[%s1783_s1 + $0x10] ss:$8 sps:$4 sm:$0xff]  }
   0xf   : > { %v1304_v2 = vld [vmem:[%s1482_s23 + $0x78] sm:$0xff]   ;;  %v1306_v4 = vld [vmem:[%s1482_s23 + $0x70] sm:$0xff]   ;;  %v1308_v6 = vld [vmem:[%s1482_s23 + $0x68] sm:$0xff]  }
  0x10   : > { %v1305_v3 = vld [vmem:[%s1482_s23 + $0x38] sm:$0xff]   ;;  %1094 = vmatprep.subr.bf16.mxu0 %v1304_v2  ;;  %1264 = vmatprep.subr.bf16.mxu1 %v1304_v2  ;;  %v1307_v5 = vld [vmem:[%s1482_s23 + $0x30] sm:$0xff]   ;;  %v1309_v7 = vld [vmem:[%s1482_s23 + $0x28] sm:$0xff]  }
  0x11   : > { %1095 = vmatpush3.bf16.msra.mxu0 %v1305_v3  ;;  %1272 = vmatpush3.bf16.msra.mxu1 %v1305_v3  ;;  %v1310_v8 = vld [vmem:[%s1482_s23 + $0x60] sm:$0xff]   ;;  %v1312_v10 = vld [vmem:[%s1482_s23 + $0x58] sm:$0xff]   ;;  %v1314_v12 = vld [vmem:[%s1482_s23 + $0x50] sm:$0xff]  }
  0x12   : > { %1096 = vmatprep.subr.bf16.mxu0 %v1306_v4  ;;  %1265 = vmatprep.subr.bf16.mxu1 %v1306_v4  ;;  %v1311_v9 = vld [vmem:[%s1482_s23 + $0x20] sm:$0xff]   ;;  %v1313_v11 = vld [vmem:[%s1482_s23 + $0x18] sm:$0xff]   ;;  %v1315_v13 = vld [vmem:[%s1482_s23 + $0x10] sm:$0xff]  }
  0x13   : > { %v1316_v14 = vld [vmem:[%s1482_s23 + $0x48] sm:$0xff]   ;;  %v1318_v16 = vld [vmem:[%s1482_s23 + $0x40] sm:$0xff]   ;;  %v1335_v25 = vld [vmem:[%s1783_s1 + $0xb4] ss:$8 sps:$4 sm:$0xff]  }
  0x14   : > { %v1317_v15 = vld [vmem:[%s1482_s23 + $0x8] sm:$0xff]   ;;  %v1319_v17 = vld [vmem:[%s1482_s23] sm:$0xff]   ;;  %v1337_v27 = vld [vmem:[%s1783_s1 + $0xb0] ss:$8 sps:$4 sm:$0xff]   ;;  %s1093_s23 = sshll.u32 %s1791_s12, 5 }
  0x15   : > { %1097 = vmatpush3.bf16.msra.mxu0 %v1307_v5  ;;  %1273 = vmatpush3.bf16.msra.mxu1 %v1307_v5  ;;  %v1331_v23 = vld [vmem:[%s1783_s1 + $0xa0] ss:$8 sps:$4 sm:$0xff]   ;;  %v1332_v24 = vld [vmem:[%s1783_s1 + $0x24] ss:$8 sps:$4 sm:$0xff]   ;;  %v1338_v28 = vld [vmem:[%s1783_s1 + $0x34] ss:$8 sps:$4 sm:$0xff]   ;;  %s201_s26 = scalar_lea.vmem %s1785_s3, %s1093_s23 }
  0x16   : > { %1098 = vmatprep.subr.bf16.mxu0 %v1308_v6  ;;  %1266 = vmatprep.subr.bf16.mxu1 %v1308_v6  ;;  %v1334_v26 = vld [vmem:[%s1783_s1 + $0x20] ss:$8 sps:$4 sm:$0xff]   ;;  %v1341_v29 = vld [vmem:[%s1783_s1 + $0xc4] ss:$8 sps:$4 sm:$0xff]   ;;  %v1340_v30 = vld [vmem:[%s1783_s1 + $0x30] ss:$8 sps:$4 sm:$0xff]  }
  0x17   : > { %v1343_v31 = vld [vmem:[%s1783_s1 + $0xc0] ss:$8 sps:$4 sm:$0xff]   ;;  %v1344_v32 = vld [vmem:[%s1783_s1 + $0x44] ss:$8 sps:$4 sm:$0xff]   ;;  %v1347_v33 = vld [vmem:[%s1783_s1 + $0xd4] ss:$8 sps:$4 sm:$0xff]  }
  0x18   : > { %v1346_v34 = vld [vmem:[%s1783_s1 + $0x40] ss:$8 sps:$4 sm:$0xff]   ;;  %v1349_v35 = vld [vmem:[%s1783_s1 + $0xd0] ss:$8 sps:$4 sm:$0xff]   ;;  %v1350_v36 = vld [vmem:[%s1783_s1 + $0x54] ss:$8 sps:$4 sm:$0xff]  }
  0x19   : > { %1099 = vmatpush3.bf16.msra.mxu0 %v1309_v7  ;;  %1274 = vmatpush3.bf16.msra.mxu1 %v1309_v7  ;;  %v1353_v37 = vld [vmem:[%s1783_s1 + $0xe4] ss:$8 sps:$4 sm:$0xff]   ;;  %v1352_v38 = vld [vmem:[%s1783_s1 + $0x50] ss:$8 sps:$4 sm:$0xff]   ;;  %v1355_v39 = vld [vmem:[%s1783_s1 + $0xe0] ss:$8 sps:$4 sm:$0xff]  }
  0x1a   : > { %1100 = vmatprep.subr.bf16.mxu0 %v1310_v8  ;;  %1267 = vmatprep.subr.bf16.mxu1 %v1310_v8  ;;  %v1356_v40 = vld [vmem:[%s1783_s1 + $0x64] ss:$8 sps:$4 sm:$0xff]   ;;  %v1359_v41 = vld [vmem:[%s1783_s1 + $0xf4] ss:$8 sps:$4 sm:$0xff]   ;;  %v1358_v42 = vld [vmem:[%s1783_s1 + $0x60] ss:$8 sps:$4 sm:$0xff]  }
  0x1b   : > { %v1361_v43 = vld [vmem:[%s1783_s1 + $0xf0] ss:$8 sps:$4 sm:$0xff]   ;;  %v1362_v44 = vld [vmem:[%s1783_s1 + $0x74] ss:$8 sps:$4 sm:$0xff]   ;;  %v1365_v46 = vld [vmem:[%s1783_s1 + $0x84] ss:$8 sps:$4 sm:$0xff]  }
  0x1c   : > { %v1364_v45 = vld [vmem:[%s1783_s1 + $0x70] ss:$8 sps:$4 sm:$0xff]   ;;  %v1367_v47 = vld [vmem:[%s1783_s1 + $0x80] ss:$8 sps:$4 sm:$0xff]  }
  0x1d   : > { %1101 = vmatpush3.bf16.msra.mxu0 %v1311_v9  ;;  %1275 = vmatpush3.bf16.msra.mxu1 %v1311_v9  ;;  %v844_v48 = vld [vmem:[%s1784_s2] sm:$0xff] }
  0x1e   : > { %1102 = vmatprep.subr.bf16.mxu0 %v1312_v10  ;;  %1268 = vmatprep.subr.bf16.mxu1 %v1312_v10 }
  0x21   : > { %1103 = vmatpush3.bf16.msra.mxu0 %v1313_v11  ;;  %1276 = vmatpush3.bf16.msra.mxu1 %v1313_v11 }
  0x22   : > { %1104 = vmatprep.subr.bf16.mxu0 %v1314_v12  ;;  %1269 = vmatprep.subr.bf16.mxu1 %v1314_v12 }
  0x25   : > { %1105 = vmatpush3.bf16.msra.mxu0 %v1315_v13  ;;  %1277 = vmatpush3.bf16.msra.mxu1 %v1315_v13 }
  0x26   : > { %1106 = vmatprep.subr.bf16.mxu0 %v1316_v14  ;;  %1270 = vmatprep.subr.bf16.mxu1 %v1316_v14 }
  0x29   : > { %1107 = vmatpush3.bf16.msra.mxu0 %v1317_v15  ;;  %1278 = vmatpush3.bf16.msra.mxu1 %v1317_v15 }
  0x2a   : > { %1108 = vmatprep.subr.bf16.mxu0 %v1318_v16  ;;  %1271 = vmatprep.subr.bf16.mxu1 %v1318_v16 }
  0x2d   : > { %1109 = vmatpush3.bf16.msra.mxu0 %v1319_v17  ;;  %1279 = vmatpush3.bf16.msra.mxu1 %v1319_v17 }
  0x30   : > { %556 = vmatmul.mubr.bf16.vlgmr.msra.gmra.mxu0 %v1320_v18  ;;  %628 = vmatmul.mubr.bf16.vlgmr.msra.gmra.mxu1 %v1323_v19 }
  0x31   : > { %563 = vmatprep.mubr.bf16.mxu0 %v1326_v20  ;;  %635 = vmatprep.mubr.bf16.mxu1 %v1329_v21 }
  0x38   : > { %564 = vmatmul.mubr.bf16.gmra.mxu0 %v1328_v22  ;;  %636 = vmatmul.mubr.bf16.gmra.mxu1 %v1331_v23 }
  0x39   : > { %571 = vmatprep.mubr.bf16.mxu0 %v1332_v24  ;;  %643 = vmatprep.mubr.bf16.mxu1 %v1335_v25 }
  0x40   : > { %572 = vmatmul.mubr.bf16.gmra.mxu0 %v1334_v26  ;;  %644 = vmatmul.mubr.bf16.gmra.mxu1 %v1337_v27 }
  0x41   : > { %579 = vmatprep.mubr.bf16.mxu0 %v1338_v28  ;;  %651 = vmatprep.mubr.bf16.mxu1 %v1341_v29 }
  0x48   : > { %580 = vmatmul.mubr.bf16.gmra.mxu0 %v1340_v30  ;;  %652 = vmatmul.mubr.bf16.gmra.mxu1 %v1343_v31 }
  0x49   : > { %587 = vmatprep.mubr.bf16.mxu0 %v1344_v32  ;;  %659 = vmatprep.mubr.bf16.mxu1 %v1347_v33 }
  0x50   : > { %588 = vmatmul.mubr.bf16.gmra.mxu0 %v1346_v34  ;;  %660 = vmatmul.mubr.bf16.gmra.mxu1 %v1349_v35 }
  0x51   : > { %595 = vmatprep.mubr.bf16.mxu0 %v1350_v36  ;;  %667 = vmatprep.mubr.bf16.mxu1 %v1353_v37 }
  0x58   : > { %596 = vmatmul.mubr.bf16.gmra.mxu0 %v1352_v38  ;;  %668 = vmatmul.mubr.bf16.gmra.mxu1 %v1355_v39 }
  0x59   : > { %603 = vmatprep.mubr.bf16.mxu0 %v1356_v40  ;;  %675 = vmatprep.mubr.bf16.mxu1 %v1359_v41 }
  0x60   : > { %604 = vmatmul.mubr.bf16.gmra.mxu0 %v1358_v42  ;;  %676 = vmatmul.mubr.bf16.gmra.mxu1 %v1361_v43 }
  0x61   : > { %611 = vmatprep.mubr.bf16.mxu0 %v1362_v44  ;;  %1258 = vmatprep.mubr.f32.mxu1 %v844_v48 }
  0x68   : > { %612 = vmatmul.mubr.bf16.gmra.mxu0 %v1364_v45 }
  0x69   : > { %619 = vmatprep.mubr.bf16.mxu0 %v1365_v46 }
  0x70   : > { %620 = vmatmul.mubr.bf16.gmra.mxu0 %v1367_v47 }
  0xf0   : > { %v1110_v49 = vpop.f32.mrf.mxu0  ;;  %v1164_v50 = vpop.f32.mrf.mxu1 }
  0xf2   : > { %v1111_v51 = vpop.f32.mrf.mxu0  ;;  %v1165_v52 = vpop.f32.mrf.mxu1 }
  0xf3   : > { %v1593_v53 = vadd.f32 %v1111_v51, %v1110_v49  ;;  %v1166_v54 = vadd.f32 %v1165_v52, %v1164_v50 }
  0xf4   : > { %v1113_v55 = vpop.f32.mrf.mxu0  ;;  %v1167_v56 = vpop.f32.mrf.mxu1 }
  0xf5   : > { %v702_v5 = vmul.f32 %v1166_v54, %v1166_v54 }
  0xf6   : > { %v1114_v57 = vpop.f32.mrf.mxu0  ;;  %v1168_v58 = vpop.f32.mrf.mxu1 }
  0xf7   : > { %v1595_v59 = vadd.f32 %v1114_v57, %v1113_v55  ;;  %v1169_v60 = vadd.f32 %v1168_v58, %v1167_v56 }
  0xf8   : > { %v1116_v61 = vpop.f32.mrf.mxu0  ;;  %v1170_v62 = vpop.f32.mrf.mxu1 }
  0xf9   : > { %v703_v13 = vmul.f32 %v1169_v60, %v1169_v60 }
  0xfa   : > { %v1117_v63 = vpop.f32.mrf.mxu0  ;;  %v1171_v0 = vpop.f32.mrf.mxu1 }
  0xfb   : > { %v1118_v1 = vadd.f32 %v1117_v63, %v1116_v61  ;;  %v1172_v2 = vadd.f32 %v1171_v0, %v1170_v62 }
  0xfc   : > { %v1119_v3 = vpop.f32.mrf.mxu0  ;;  %v1597_v4 = vpop.f32.mrf.mxu1 }
  0xfd   : > { %v686_v6 = vmul.f32 %v1118_v1, %v1118_v1  ;;  %v704_v21 = vmul.f32 %v1172_v2, %v1172_v2 }
  0xfe   : > { %v1120_v7 = vpop.f32.mrf.mxu0  ;;  %v1599_v8 = vpop.f32.mrf.mxu1 }
  0xff   : > { %v1601_v9 = vadd.f32 %v702_v5, %v686_v6  ;;  %v1121_v10 = vadd.f32 %v1120_v7, %v1119_v3 }
 0x100   : > { %v1122_v11 = vpop.f32.mrf.mxu0  ;;  %v1603_v12 = vpop.f32.mrf.mxu1 }
 0x101   : > { %v687_v14 = vmul.f32 %v1121_v10, %v1121_v10 }
 0x102   : > { %v1123_v15 = vpop.f32.mrf.mxu0  ;;  %v1605_v16 = vpop.f32.mrf.mxu1 }
 0x103   : > { %v1607_v17 = vadd.f32 %v703_v13, %v687_v14  ;;  %v1124_v18 = vadd.f32 %v1123_v15, %v1122_v11 }
 0x104   : > { %v1609_v19 = vpop.f32.mrf.mxu0  ;;  %v1611_v20 = vpop.f32.mrf.mxu1 }
 0x105   : > { %v688_v22 = vmul.f32 %v1124_v18, %v1124_v18 }
 0x106   : > { %v1613_v23 = vpop.f32.mrf.mxu0  ;;  %v1615_v24 = vpop.f32.mrf.mxu1 }
 0x107   : > { %v1617_v25 = vadd.f32 %v704_v21, %v688_v22 }
 0x108   : > { %v1619_v26 = vpop.f32.mrf.mxu0  ;;  %v1621_v27 = vpop.f32.mrf.mxu1 }
 0x10a   : > { %v1623_v28 = vpop.f32.mrf.mxu0  ;;  %v1625_v29 = vpop.f32.mrf.mxu1 }
 0x10c   : > { %v1627_v30 = vpop.f32.mrf.mxu0  ;;  %v1185_v31 = vpop.f32.mrf.mxu1 }
 0x10e   : > { %v1132_v32 = vpop.f32.mrf.mxu0  ;;  %v1186_v33 = vpop.f32.mrf.mxu1 }
 0x110   : > { %v1134_v34 = vpop.f32.mrf.mxu0  ;;  %v1188_v35 = vpop.f32.mrf.mxu1 }
 0x112   : > { %v1135_v36 = vpop.f32.mrf.mxu0  ;;  %v1189_v37 = vpop.f32.mrf.mxu1 }
 0x113   : > { %v1190_v22 = vadd.f32 %v1189_v37, %v1188_v35  ;;  %v1184_v37 = vadd.f32 %v1625_v29, %v1621_v27 }
 0x114   : > { %v1137_v38 = vpop.f32.mrf.mxu0  ;;  %v1191_v39 = vpop.f32.mrf.mxu1 }
 0x116   : > { %v1138_v40 = vpop.f32.mrf.mxu0  ;;  %v1192_v41 = vpop.f32.mrf.mxu1 }
 0x117   : > { %v1193_v7 = vadd.f32 %v1192_v41, %v1191_v39 }
 0x118   : > { %v1140_v42 = vpop.f32.mrf.mxu0  ;;  %v1194_v43 = vpop.f32.mrf.mxu1 }
 0x119   : > { %v711_v39 = vmul.f32 %v1193_v7, %v1193_v7 }
 0x11a   : > { %v1141_v44 = vpop.f32.mrf.mxu0  ;;  %v1195_v45 = vpop.f32.mrf.mxu1 }
 0x11b   : > { %v1196_v0 = vadd.f32 %v1195_v45, %v1194_v43  ;;  %v1142_v10 = vadd.f32 %v1141_v44, %v1140_v42 }
 0x11c   : > { %v1143_v46 = vpop.f32.mrf.mxu0  ;;  %v1197_v47 = vpop.f32.mrf.mxu1 }
 0x11d   : > { %v694_v44 = vmul.f32 %v1142_v10, %v1142_v10  ;;  %v684_v10 = vmul.f32 %v1593_v53, %v1593_v53 }
 0x11e   : > { %v1144_v48 = vpop.f32.mrf.mxu0  ;;  %v1198_v49 = vpop.f32.mrf.mxu1 }
 0x11f   : > { %v1199_v62 = vadd.f32 %v1198_v49, %v1197_v47  ;;  %v1145_v3 = vadd.f32 %v1144_v48, %v1143_v46  ;;  %v1187_v46 = vadd.f32 %v1186_v33, %v1185_v31  ;;  %v1136_v48 = vadd.f32 %v1135_v36, %v1134_v34 }
 0x120   : > { %v1146_v50 = vpop.f32.mrf.mxu0  ;;  %v1200_v51 = vpop.f32.mrf.mxu1  ;;  %v1181_v33 = vadd.f32 %v1615_v24, %v1611_v20  ;;  %v1130_v34 = vadd.f32 %v1623_v28, %v1619_v26  ;;  %v1175_v24 = vadd.f32 %v1599_v8, %v1597_v4 }
 0x121   : > { %v713_v14 = vmul.f32 %v1199_v62, %v1199_v62  ;;  %v695_v47 = vmul.f32 %v1145_v3, %v1145_v3  ;;  %v692_v27 = vmul.f32 %v1136_v48, %v1136_v48 }
 0x122   : > { %v1147_v52 = vpop.f32.mrf.mxu0  ;;  %v1201_v54 = vpop.f32.mrf.mxu1  ;;  %v707_v28 = vmul.f32 %v1181_v33, %v1181_v33 }
 0x123   : > { %v1148_v60 = vadd.f32 %v1147_v52, %v1146_v50  ;;  %v1202_v63 = vadd.f32 %v1201_v54, %v1200_v51  ;;  %v712_v50 = vmul.f32 %v1196_v0, %v1196_v0 }
 0x124   : > { %v1149_v55 = vpop.f32.mrf.mxu0  ;;  %v1203_v57 = vpop.f32.mrf.mxu1 }
 0x125   : > { %v696_v11 = vmul.f32 %v1148_v60, %v1148_v60  ;;  %v714_v15 = vmul.f32 %v1202_v63, %v1202_v63 }
 0x126   : > { %v1150_v56 = vpop.f32.mrf.mxu0  ;;  %v1204_v1 = vpop.f32.mrf.mxu1 }
 0x127   : > { %v1151_v58 = vadd.f32 %v1150_v56, %v1149_v55  ;;  %v1205_v18 = vadd.f32 %v1204_v1, %v1203_v57  ;;  %v1139_v55 = vadd.f32 %v1138_v40, %v1137_v38  ;;  %v1633_v41 = vadd.f32 %v712_v50, %v696_v11 }
 0x128   : > { %v1152_v61 = vpop.f32.mrf.mxu0  ;;  %v1133_v38 = vadd.f32 %v1132_v32, %v1627_v30  ;;  %v710_v40 = vmul.f32 %v1190_v22, %v1190_v22  ;;  %v1639_v56 = vadd.f32 %v711_v39, %v695_v47  ;;  %v709_v57 = vmul.f32 %v1187_v46, %v1187_v46 }
 0x129   : > { %v697_v5 = vmul.f32 %v1151_v58, %v1151_v58  ;;  %v715_v51 = vmul.f32 %v1205_v18, %v1205_v18  ;;  %v693_v54 = vmul.f32 %v1139_v55, %v1139_v55  ;;  %v1178_v30 = vadd.f32 %v1605_v16, %v1603_v12 }
 0x12a   : > { %v1153_v2 = vpop.f32.mrf.mxu0  ;;  %v1647_v29 = vadd.f32 %v710_v40, %v694_v44  ;;  %v1127_v32 = vadd.f32 %v1613_v23, %v1609_v19  ;;  %v708_v58 = vmul.f32 %v1184_v37, %v1184_v37  ;;  %v691_v60 = vmul.f32 %v1133_v38, %v1133_v38 }
 0x12b   : > { %v1154_v6 = vadd.f32 %v1153_v2, %v1152_v61  ;;  %v1629_v49 = vadd.f32 %v713_v14, %v697_v5  ;;  %v1653_v20 = vadd.f32 %v709_v57, %v693_v54  ;;  %v690_v61 = vmul.f32 %v1130_v34, %v1130_v34 }
 0x12c   : > { %v1155_v13 = vpop.f32.mrf.mxu0  ;;  %v1658_v62 = vadd.f32 %v708_v58, %v692_v27  ;;  %v706_v12 = vmul.f32 %v1178_v30, %v1178_v30  ;;  %v689_v16 = vmul.f32 %v1127_v32, %v1127_v32  ;;  %v1661_v63 = vadd.f32 %v707_v28, %v691_v60 }
 0x12d   : > { %v698_v21 = vmul.f32 %v1154_v6, %v1154_v6  ;;  %v705_v23 = vmul.f32 %v1175_v24, %v1175_v24  ;;  %v685_v11 = vmul.f32 %v1595_v59, %v1595_v59  ;;  %vm825_vm3 = vcmp.eq.f32.partialorder %v1629_v49, inf }
 0x12e   : > { %v1156_v52 = vpop.f32.mrf.mxu0  ;;  %v1664_v0 = vadd.f32 %v706_v12, %v690_v61  ;;  %v828_v44 = vand.u32 2147483648, %v1629_v49  ;;  %vm818_vm5 = vcmp.eq.f32.partialorder %v1633_v41, inf  ;;  %vm827_vm6 = vcmp.eq.f32.partialorder %v1629_v49, 0.0 }
 0x12f   : > { %v1631_v43 = vadd.f32 %v714_v15, %v698_v21  ;;  %v1157_v45 = vadd.f32 %v1156_v52, %v1155_v13  ;;  %v1667_v8 = vadd.f32 %v705_v23, %v689_v16  ;;  %v821_v40 = vand.u32 2147483648, %v1633_v41 }
 0x130   : > { %v1158_v42 = vpop.f32.mrf.mxu0  ;;  %vm811_vm7 = vcmp.eq.f32.partialorder %v1639_v56, inf  ;;  %vm820_vm8 = vcmp.eq.f32.partialorder %v1633_v41, 0.0  ;;  %v814_v34 = vand.u32 2147483648, %v1639_v56  ;;  %vm804_vm9 = vcmp.eq.f32.partialorder %v1647_v29, inf }
 0x131   : > { %1368 = vrsqrt.f32 %v1631_v43  ;;  %v699_v35 = vmul.f32 %v1157_v45, %v1157_v45  ;;  %vm832_vm1 = vcmp.eq.f32.partialorder %v1631_v43, inf  ;;  %v835_v47 = vand.u32 2147483648, %v1631_v43 }
 0x132   : > { %1370 = vrsqrt.f32 %v1629_v49  ;;  %v1159_v36 = vpop.f32.mrf.mxu0  ;;  %vm834_vm4 = vcmp.eq.f32.partialorder %v1631_v43, 0.0  ;;  %vm813_vm10 = vcmp.eq.f32.partialorder %v1639_v56, 0.0  ;;  %v807_v30 = vand.u32 2147483648, %v1647_v29 }
 0x133   : > { %v731_v31 = vadd.f32 %v715_v51, %v699_v35  ;;  %1372 = vrsqrt.f32 %v1633_v41  ;;  %v1160_v3 = vadd.f32 %v1159_v36, %v1158_v42  ;;  %vm797_vm11 = vcmp.eq.f32.partialorder %v1653_v20, inf }
 0x134   : > { %v1161_v26 = vpop.f32.mrf.mxu0  ;;  %vm806_vm12 = vcmp.eq.f32.partialorder %v1647_v29, 0.0  ;;  %vm790_vm13 = vcmp.eq.f32.partialorder %v1658_v62, inf  ;;  %vm799_vm14 = vcmp.eq.f32.partialorder %v1653_v20, 0.0  ;;  %v793_v12 = vand.u32 2147483648, %v1658_v62 }
 0x135   : > { %1374 = vrsqrt.f32 %v731_v31  ;;  %v700_v21 = vmul.f32 %v1160_v3, %v1160_v3  ;;  %vm839_vm0 = vcmp.eq.f32.partialorder %v731_v31, inf  ;;  %v842_v22 = vand.u32 2147483648, %v731_v31 }
 0x136   : > { %1376 = vrsqrt.f32 %v1639_v56  ;;  %v1162_v19 = vpop.f32.mrf.mxu0  ;;  %vm841_vm2 = vcmp.eq.f32.partialorder %v731_v31, 0.0  ;;  %vm783_vm15 = vcmp.eq.f32.partialorder %v1661_v63, inf }
 0x137   : > { %1378 = vrsqrt.f32 %v1647_v29  ;;  %v1163_v1 = vadd.f32 %v1162_v19, %v1161_v26  ;;  %v1693_v51 = vadd.f32 %v700_v21, %v684_v10  ;;  %v800_v26 = vand.u32 2147483648, %v1653_v20 }
 0x138   : > { %1380 = vrsqrt.f32 %v1653_v20 }
 0x139   : > { %1382 = vrsqrt.f32 %v1658_v62  ;;  %v701_v13 = vmul.f32 %v1163_v1, %v1163_v1 }
 0x13a   : > { %1384 = vrsqrt.f32 %v1661_v63 }
 0x13b   : > { %1386 = vrsqrt.f32 %v1664_v0  ;;  %v1685_v45 = vadd.f32 %v701_v13, %v685_v11  ;;  %v772_v11 = vand.u32 2147483648, %v1667_v8 }
 0x13c   : > { %1388 = vrsqrt.f32 %v1617_v25 }
 0x13d   : > { %1390 = vrsqrt.f32 %v1667_v8 }
 0x13e   : > { %v1369_v4 = vpop.eup %1368  ;;  %1392 = vrsqrt.f32 %v1607_v17 }
 0x13f   : > { %v1371_v2 = vpop.eup %1370  ;;  %v831_v6 = vmul.f32 %v1369_v4, %v1631_v43  ;;  %1394 = vrsqrt.f32 %v1601_v9  ;;  %v786_v4 = vand.u32 2147483648, %v1661_v63 }
 0x140   : > { %v1373_v5 = vpop.eup %1372  ;;  %v824_v15 = vmul.f32 %v1371_v2, %v1629_v49  ;;  %1396 = vrsqrt.f32 %v1685_v45 }
 0x141   : > { %v833_v53 = vsel %vm832_vm1, %v1631_v43, %v831_v6  ;;  %v817_v59 = vmul.f32 %v1373_v5, %v1633_v41  ;;  %1398 = vrsqrt.f32 %v1693_v51  ;;  %vm776_vm1 = vcmp.eq.f32.partialorder %v1664_v0, inf }
 0x142   : > { %v1375_v7 = vpop.eup %1374  ;;  %v826_v46 = vsel %vm825_vm3, %v1629_v49, %v824_v15  ;;  %v836_v42 = vsel %vm834_vm4, %v835_v47, %v833_v53  ;;  %v779_v5 = vand.u32 2147483648, %v1664_v0  ;;  %vm769_vm3 = vcmp.eq.f32.partialorder %v1667_v8, inf }
 0x143   : > { %v838_v14 = vmul.f32 %v1375_v7, %v731_v31  ;;  %v1377_v18 = vpop.eup %1376  ;;  %v819_v43 = vsel %vm818_vm5, %v1633_v41, %v817_v59  ;;  %v829_v38 = vsel %vm827_vm6, %v828_v44, %v826_v46  ;;  %vm778_vm4 = vcmp.eq.f32.partialorder %v1664_v0, 0.0  ;;  %v847_v44 = vld [vmem:[%s1784_s2 + $0x18] sm:$0xff] }
 0x144   : > { %v1379_v50 = vpop.eup %1378  ;;  %v810_v48 = vmul.f32 %v1377_v18, %v1639_v56  ;;  %v822_v33 = vsel %vm820_vm8, %v821_v40, %v819_v43  ;;  %vm762_vm5 = vcmp.eq.f32.partialorder %v1617_v25, inf  ;;  %vm771_vm6 = vcmp.eq.f32.partialorder %v1667_v8, 0.0 }
 0x145   : > { %v840_v55 = vsel %vm839_vm0, %v731_v31, %v838_v14  ;;  %v1381_v39 = vpop.eup %1380  ;;  %v803_v35 = vmul.f32 %v1379_v50, %v1647_v29  ;;  %vm792_vm0 = vcmp.eq.f32.partialorder %v1658_v62, 0.0  ;;  %v765_v18 = vand.u32 2147483648, %v1617_v25 }
 0x146   : > { %v843_v52 = vsel %vm841_vm2, %v842_v22, %v840_v55  ;;  %v1383_v37 = vpop.eup %1382  ;;  %v812_v54 = vsel %vm811_vm7, %v1639_v56, %v810_v48  ;;  %v796_v49 = vmul.f32 %v1381_v39, %v1653_v20  ;;  %vm785_vm2 = vcmp.eq.f32.partialorder %v1661_v63, 0.0 }
 0x147   : > { %1226 = vmatprep.subr.mxu1 %v843_v52  ;;  %v1385_v31 = vpop.eup %1384  ;;  %v805_v36 = vsel %vm804_vm9, %v1647_v29, %v803_v35  ;;  %v789_v41 = vmul.f32 %v1383_v37, %v1658_v62  ;;  %v815_v27 = vsel %vm813_vm10, %v814_v34, %v812_v54  ;;  %vm755_vm7 = vcmp.eq.f32.partialorder %v1607_v17, inf }
 0x148   : > { %1227 = vmatpush3.msra.mxu1 %v843_v52  ;;  %v1387_v57 = vpop.eup %1386  ;;  %v798_v58 = vsel %vm797_vm11, %v1653_v20, %v796_v49  ;;  %v782_v60 = vmul.f32 %v1385_v31, %v1661_v63  ;;  %v808_v24 = vsel %vm806_vm12, %v807_v30, %v805_v36  ;;  %vm764_vm8 = vcmp.eq.f32.partialorder %v1617_v25, 0.0 }
 0x149   : > { %1228 = vmatprep.subr.mxu1 %v836_v42  ;;  %v1389_v32 = vpop.eup %1388  ;;  %v791_v28 = vsel %vm790_vm13, %v1658_v62, %v789_v41  ;;  %v775_v61 = vmul.f32 %v1387_v57, %v1664_v0  ;;  %v801_v29 = vsel %vm799_vm14, %v800_v26, %v798_v58  ;;  %v758_v55 = vand.u32 2147483648, %v1607_v17 }
 0x14a   : > { %1229 = vmatpush3.msra.mxu1 %v836_v42  ;;  %v1391_v56 = vpop.eup %1390  ;;  %v784_v19 = vsel %vm783_vm15, %v1661_v63, %v782_v60  ;;  %v794_v20 = vsel %vm792_vm0, %v793_v12, %v791_v28  ;;  %v761_v3 = vmul.f32 %v1389_v32, %v1617_v25  ;;  %vm748_vm9 = vcmp.eq.f32.partialorder %v1601_v9, inf  ;;  %v845_v42 = vld [vmem:[%s1784_s2 + $0x8] sm:$0xff] }
 0x14b   : > { %1230 = vmatprep.subr.mxu1 %v829_v38  ;;  %v1393_v16 = vpop.eup %1392  ;;  %v768_v23 = vmul.f32 %v1391_v56, %v1667_v8  ;;  %v777_v2 = vsel %vm776_vm1, %v1664_v0, %v775_v61  ;;  %v787_v62 = vsel %vm785_vm2, %v786_v4, %v784_v19  ;;  %vm757_vm10 = vcmp.eq.f32.partialorder %v1607_v17, 0.0 }
 0x14c   : > { %1231 = vmatpush3.msra.mxu1 %v829_v38  ;;  %v1395_v1 = vpop.eup %1394  ;;  %v754_v7 = vmul.f32 %v1393_v16, %v1607_v17  ;;  %v780_v63 = vsel %vm778_vm4, %v779_v5, %v777_v2  ;;  %v763_v13 = vsel %vm762_vm5, %v1617_v25, %v761_v3  ;;  %v751_v25 = vand.u32 2147483648, %v1601_v9 }
 0x14d   : > { %1232 = vmatprep.subr.mxu1 %v822_v33  ;;  %v770_v6 = vsel %vm769_vm3, %v1667_v8, %v768_v23  ;;  %v1397_v10 = vpop.eup %1396  ;;  %v747_v14 = vmul.f32 %v1395_v1, %v1601_v9  ;;  %v766_v8 = vsel %vm764_vm8, %v765_v18, %v763_v13  ;;  %vm741_vm11 = vcmp.eq.f32.partialorder %v1685_v45, inf }
 0x14e   : > { %1233 = vmatpush3.msra.mxu1 %v822_v33  ;;  %v1399_v15 = vpop.eup %1398  ;;  %v773_v0 = vsel %vm771_vm6, %v772_v11, %v770_v6  ;;  %v756_v21 = vsel %vm755_vm7, %v1607_v17, %v754_v7  ;;  %v740_v22 = vmul.f32 %v1397_v10, %v1685_v45  ;;  %vm750_vm12 = vcmp.eq.f32.partialorder %v1601_v9, 0.0 }
 0x14f   : > { %1234 = vmatprep.subr.mxu1 %v815_v27  ;;  %v749_v53 = vsel %vm748_vm9, %v1601_v9, %v747_v14  ;;  %v733_v59 = vmul.f32 %v1399_v15, %v1693_v51  ;;  %v759_v50 = vsel %vm757_vm10, %v758_v55, %v756_v21  ;;  %v744_v46 = vand.u32 2147483648, %v1685_v45 }
 0x150   : > { %1235 = vmatpush3.msra.mxu1 %v815_v27  ;;  %v742_v52 = vsel %vm741_vm11, %v1685_v45, %v740_v22  ;;  %v752_v47 = vsel %vm750_vm12, %v751_v25, %v749_v53  ;;  %vm734_vm13 = vcmp.eq.f32.partialorder %v1693_v51, inf  ;;  %vm743_vm14 = vcmp.eq.f32.partialorder %v1685_v45, 0.0  ;;  %v846_v45 = vld [vmem:[%s1784_s2 + $0x10] sm:$0xff] }
 0x151   : > { %1236 = vmatprep.subr.mxu1 %v808_v24  ;;  %v735_v17 = vsel %vm734_vm13, %v1693_v51, %v733_v59  ;;  %v745_v48 = vsel %vm743_vm14, %v744_v46, %v742_v52  ;;  %v737_v39 = vand.u32 2147483648, %v1693_v51  ;;  %vm736_vm15 = vcmp.eq.f32.partialorder %v1693_v51, 0.0 }
 0x152   : > { %1237 = vmatpush3.msra.mxu1 %v808_v24  ;;  %vm945_vm0 = vcmask 130048  }
 0x153   : > { %1238 = vmatprep.subr.mxu1 %v801_v29  ;;  %v738_v9 = vsel %vm736_vm15, %v737_v39, %v735_v17 }
 0x154   : > { %1239 = vmatpush3.msra.mxu1 %v801_v29 }
 0x155   : > { %1240 = vmatprep.subr.mxu1 %v794_v20 }
 0x156   : > { %1241 = vmatpush3.msra.mxu1 %v794_v20 }
 0x157   : > { %1242 = vmatprep.subr.mxu1 %v787_v62 }
 0x158   : > { %1243 = vmatpush3.msra.mxu1 %v787_v62 }
 0x159   : > { %1244 = vmatprep.subr.mxu1 %v780_v63 }
 0x15a   : > { %1245 = vmatpush3.msra.mxu1 %v780_v63 }
 0x15b   : > { %1246 = vmatprep.subr.mxu1 %v773_v0 }
 0x15c   : > { %1247 = vmatpush3.msra.mxu1 %v773_v0 }
 0x15d   : > { %1248 = vmatprep.subr.mxu1 %v766_v8 }
 0x15e   : > { %1249 = vmatpush3.msra.mxu1 %v766_v8 }
 0x15f   : > { %1250 = vmatprep.subr.mxu1 %v759_v50 }
 0x160   : > { %1251 = vmatpush3.msra.mxu1 %v759_v50 }
 0x161   : > { %1252 = vmatprep.subr.mxu1 %v752_v47 }
 0x162   : > { %1253 = vmatpush3.msra.mxu1 %v752_v47 }
 0x163   : > { %1254 = vmatprep.subr.mxu1 %v745_v48 }
 0x164   : > { %1255 = vmatpush3.msra.mxu1 %v745_v48 }
 0x165   : > { %1256 = vmatprep.subr.mxu1 %v738_v9 }
 0x166   : > { %1257 = vmatpush3.msra.mxu1 %v738_v9 }
 0x167   : > { %1259 = vmatmul.mubr.f32.vlgmr.msra.gmra.mxu1 %v845_v42 }
 0x168   : > { %1261 = vmatprep.mubr.f32.mxu1 %v846_v45 }
 0x16b   : > { %1262 = vmatmul.mubr.f32.gmra.mxu1 %v847_v44 }
 0x227   : > { %v1260_v51 = vpop.f32.mrf.mxu1 }
 0x228   : > { %v934_v43 = vmax.f32 %v1260_v51, 1e-05 }
 0x229   : > { %v914_v35 = vpop.f32.mrf.mxu1 }
 0x22a   : > { %1400 = vlog2.f32 %v934_v43  ;;  %v933_v37 = vmax.f32 %v914_v35, 1e-05 }
 0x22b   : > { %v1263_v38 = vpop.f32.mrf.mxu1 }
 0x22c   : > { %1402 = vlog2.f32 %v933_v37  ;;  %v936_v40 = vmax.f32 %v1263_v38, 1e-05 }
 0x22d   : > { %v924_v54 = vpop.f32.mrf.mxu1 }
 0x22e   : > { %1404 = vlog2.f32 %v936_v40  ;;  %v935_v49 = vmax.f32 %v924_v54, 1e-05 }
 0x230   : > { %1406 = vlog2.f32 %v935_v49 }
 0x237   : > { %v1401_v31 = vpop.eup %1400 }
 0x238   : > { %v940_v33 = vmul.f32 0.6931472, %v1401_v31 }
 0x239   : > { %v1403_v34 = vpop.eup %1402 }
 0x23a   : > { %947 = vst.msk [vmem:[%s201_s26 + $0x8] sm:$0xff] %vm945_vm0, %v940_v33  ;;  %v938_v36 = vmul.f32 0.6931472, %v1403_v34 }
 0x23b   : > { %v1405_v41 = vpop.eup %1404 }
 0x23c   : > { %946 = vst.msk [vmem:[%s201_s26] sm:$0xff] %vm945_vm0, %v938_v36  ;;  %v944_v57 = vmul.f32 0.6931472, %v1405_v41 }
 0x23d   : > { %v1407_v27 = vpop.eup %1406 }
 0x23e   : > { %949 = vst.msk [vmem:[%s201_s26 + $0x18] sm:$0xff] %vm945_vm0, %v944_v57  ;;  %v942_v30 = vmul.f32 0.6931472, %v1407_v27 }
 0x240   : > { %948 = vst.msk [vmem:[%s201_s26 + $0x10] sm:$0xff] %vm945_vm0, %v942_v30 }
 0x241 PF: > { %s13_s14 = sadd.s32 1, %s1430_s14   ;;  %s1786_s12 = smov %s1426_s13 }
 0x242   : > { %p10_p5 = scmp.ge.s32.totalorder %s13_s14, 4   ;;  %s1787_s13 = smov %s1789_s15 }
 0x244   :  { %12 = sbr.rel (!%p10_p5) target bundleno = 2 (0x2), region = 62 }

</bundles_post_ra>
